<compile_context>
chip_gen: v7x
topology: tpu7x:2x2x1
jax: 0.10.0
libtpu: 0.0.40
codegen_flags: <defaults>
</compile_context>

<pallas_src>
import functools
import math

import jax
import jax.numpy as jnp
from jax.experimental import pallas as pl
from jax.experimental.pallas import tpu as pltpu


def _tlu_kernel(x_ref, tau_ref, o_ref, *, row_tile):
    # x_ref / o_ref: (row_tile, col_tile) tile of the (NC_pad, HW_pad) slab.
    # tau_ref: full (NC_pad, 1) per-row thresholds, resident in VMEM (constant
    # block index => a single DMA for the whole grid).
    i = pl.program_id(0)
    r0 = pl.multiple_of(i * row_tile, row_tile)
    tau = tau_ref[pl.ds(r0, row_tile), :]            # (row_tile, 1)
    o_ref[...] = jnp.maximum(x_ref[...], tau)        # broadcast over lane dim


def tlu_forward(x, tau, *, max_tile_bytes=2 * 1024 * 1024, max_col_tile=2048):
    """Elementwise max(x, tau) with tau broadcast per channel.

    x:   (N, C, *spatial) array.
    tau: (1, C, 1, ..., 1) array (same ndim as x).
    """
    orig_shape = x.shape
    N, C = orig_shape[0], orig_shape[1]
    HW = int(math.prod(orig_shape[2:])) if x.ndim > 2 else 1
    NC = N * C

    itemsize = jnp.dtype(x.dtype).itemsize
    sublane = max(8, 32 // itemsize)   # 8 for f32, 16 for bf16, 32 for int8
    lane = 128

    # ---- tile selection: large, lane-dense blocks, ~max_tile_bytes per buffer ----
    col_tile = min(max_col_tile, pl.cdiv(max(HW, 1), lane) * lane)
    HW_pad = pl.cdiv(max(HW, 1), col_tile) * col_tile

    rows_cap = max(sublane, max_tile_bytes // (col_tile * itemsize))
    rows_cap = (rows_cap // sublane) * sublane
    row_tile = min(rows_cap, pl.cdiv(NC, sublane) * sublane)
    NC_pad = pl.cdiv(NC, row_tile) * row_tile

    # ---- glue (plain JAX): flatten, per-row tau, pad to tile multiples ----
    x2d = x.reshape(NC, HW)
    tau_rows = jnp.broadcast_to(tau.reshape(1, C), (N, C)).reshape(NC, 1)
    tau_rows = tau_rows.astype(x.dtype)

    if (NC_pad, HW_pad) != (NC, HW):
        x2d = jnp.pad(x2d, ((0, NC_pad - NC), (0, HW_pad - HW)))
    if NC_pad != NC:
        tau_rows = jnp.pad(tau_rows, ((0, NC_pad - NC), (0, 0)))

    grid = (NC_pad // row_tile, HW_pad // col_tile)

    # VMEM budget: x tile + out tile, double buffered, plus the resident tau and slack.
    tile_bytes = row_tile * col_tile * itemsize
    tau_bytes = NC_pad * lane * itemsize
    vmem_budget = 4 * tile_bytes + tau_bytes + (2 << 20)
    vmem_limit = int(min(max(vmem_budget, 16 * 1024 * 1024), 32 * 1024 * 1024))

    kernel = functools.partial(_tlu_kernel, row_tile=row_tile)

    out2d = pl.pallas_call(
        kernel,
        out_shape=jax.ShapeDtypeStruct((NC_pad, HW_pad), x.dtype),
        grid_spec=pltpu.PrefetchScalarGridSpec(
            num_scalar_prefetch=0,
            grid=grid,
            in_specs=[
                pl.BlockSpec((row_tile, col_tile), lambda i, j: (i, j)),
                # Full tau, constant block index -> loaded once, stays resident.
                pl.BlockSpec((NC_pad, 1), lambda i, j: (0, 0)),
            ],
            out_specs=pl.BlockSpec((row_tile, col_tile), lambda i, j: (i, j)),
        ),
        compiler_params=pltpu.CompilerParams(
            dimension_semantics=("parallel", "parallel"),
            vmem_limit_bytes=vmem_limit,
        ),
    )(x2d, tau_rows)

    return out2d[:NC, :HW].reshape(orig_shape)


if __name__ == "__main__":
    key = jax.random.PRNGKey(0)
    kx, kt, kx2, kt2 = jax.random.split(key, 4)

    # Aligned demo shape (matches module usage at ndim=4).
    N, C, H, W = 2, 4, 16, 16
    x = jax.random.normal(kx, (N, C, H, W), dtype=jnp.float32)
    tau = jax.random.normal(kt, (1, C, 1, 1), dtype=jnp.float32) * 0.1

    out = tlu_forward(x, tau)
    jax.block_until_ready(out)
    ref = jnp.maximum(x, tau)
    assert out.shape == x.shape and out.dtype == x.dtype
    assert jnp.allclose(out, ref), "mismatch vs reference (aligned case)"

    # Non-aligned shape (exercises the padding path that replaced the assert).
    N2, C2, H2, W2 = 2, 3, 7, 7
    x2 = jax.random.normal(kx2, (N2, C2, H2, W2), dtype=jnp.float32)
    tau2 = jax.random.normal(kt2, (1, C2, 1, 1), dtype=jnp.float32) * 0.1

    out2 = tlu_forward(x2, tau2)
    jax.block_until_ready(out2)
    ref2 = jnp.maximum(x2, tau2)
    assert out2.shape == x2.shape and out2.dtype == x2.dtype
    assert jnp.allclose(out2, ref2), "mismatch vs reference (padded case)"

    print("KERNEL_OK")
</pallas_src>

<mosaic_0001>
module attributes {stable_mosaic.version = 11 : i64} {
  func.func @_tlu_kernel(%arg0: i32, %arg1: i32, %arg2: memref<8x256xf32, #tpu.memory_space<vmem>>, %arg3: memref<8x1xf32, #tpu.memory_space<vmem>>, %arg4: memref<8x256xf32, #tpu.memory_space<vmem>>) attributes {dimension_semantics = [#tpu.dimension_semantics<parallel>, #tpu.dimension_semantics<parallel>], iteration_bounds = array<i64: 1, 1>, scalar_prefetch = 0 : i64, scratch_operands = 0 : i64, tpu.core_type = #tpu.core_type<tc>, window_params = [{transform_indices = @transform_0, window_bounds = array<i64: 8, 256>}, {pipeline_mode = #tpu.pipeline_mode<synchronous>, transform_indices = @transform_1, window_bounds = array<i64: 8, 1>}, {transform_indices = @transform_2, window_bounds = array<i64: 8, 256>}]} {
    %c8_i32 = arith.constant 8 : i32
    %0 = arith.muli %arg0, %c8_i32 : i32
    %1 = tpu.assume_multiple %0, 8 : i32
    %2 = arith.index_cast %1 : i32 to index
    %c0 = arith.constant 0 : index
    %3 = vector.load %arg3[%2, %c0] : memref<8x1xf32, #tpu.memory_space<vmem>>, vector<8x1xf32>
    %c0_0 = arith.constant 0 : index
    %c0_1 = arith.constant 0 : index
    %4 = vector.load %arg2[%c0_0, %c0_1] : memref<8x256xf32, #tpu.memory_space<vmem>>, vector<8x256xf32>
    %5 = vector.broadcast %3 : vector<8x1xf32> to vector<8x256xf32>
    %6 = arith.maximumf %4, %5 : vector<8x256xf32>
    %c0_2 = arith.constant 0 : index
    %c0_3 = arith.constant 0 : index
    %7 = vector.load %arg4[%c0_2, %c0_3] : memref<8x256xf32, #tpu.memory_space<vmem>>, vector<8x256xf32>
    tpu.vector_store %arg4[%c0_2, %c0_3], %6 {strides = array<i32>} : memref<8x256xf32, #tpu.memory_space<vmem>>, vector<8x256xf32>,
    return
  }
  func.func @transform_0(%arg0: i32, %arg1: i32) -> (i32, i32) {
    %c0_i32 = arith.constant 0 : i32
    return %arg0, %arg1 : i32, i32
  }
  func.func @transform_1(%arg0: i32, %arg1: i32) -> (i32, i32) {
    %c0_i32 = arith.constant 0 : i32
    %c0_i32_0 = arith.constant 0 : i32
    %c0_i32_1 = arith.constant 0 : i32
    return %c0_i32, %c0_i32_0 : i32, i32
  }
  func.func @transform_2(%arg0: i32, %arg1: i32) -> (i32, i32) {
    %c0_i32 = arith.constant 0 : i32
    return %arg0, %arg1 : i32, i32
  }
}

</mosaic_0001>

<bundles_post_ra>
// kernel: tpu_custom_call.1
= control target key start
LH: loop header
LB: loop body
LE: loop exit
PB: predicated region body
PF: predicated region fallthrough
CT: control target
= control target key end

     0   :  { %7 = vsyncpa [#allocation3], 0  ;;  %s150_s0 = inlined_call_operand.hbm [shape: f32[8,256], index: 0, kind: input, shape index: {}]   ;;  %s151_s1 = inlined_call_operand.vmem [shape: f32[8,1], index: 1, kind: input, shape index: {}]   ;;  %s152_s2 = inlined_call_operand.hbm [shape: f32[8,256], index: 2, kind: output, shape index: {}]  }
   0x1   :  { %8 = vsyncpa [#allocation4], 0  ;;  %s105_s9 = smov [#allocation2]   ;;  %s57_s13 = scalar_lea.hbm %s150_s0, 256 }
   0x2   :  { %s15_s10 = sshll.u32 %s105_s9, 4  ;;  %p58_p0 = scmp.ne.s32.totalorder %s150_s0, %s57_s13  ;;  %s16_s10 = int_to_ptr.vmem [resolvable:$true] %s15_s10 }
   0x3   :  { %p61_p1 = scmp.lt.u32.totalorder %s57_s13, %s150_s0 }
   0x5   :  { %p63_p2 = pnand %p61_p1, %p58_p0 }
   0x7   :  { %66 = shalt.err (!%p63_p2)
}
   0x8   :  { %s67_s18 = scalar_lea.vmem %s16_s10, 256  ;;  %p72_p4 = scmp.lt.s32.totalorder %s16_s10, %s16_s10 }
   0x9   :  { %p68_p3 = scmp.ne.s32.totalorder %s16_s10, %s67_s18  ;;  %p73_p5 = scmp.lt.s32.totalorder %s67_s18, %s67_s18 }
   0xb   :  { %p74_p6 = por %p73_p5, %p72_p4 }
   0xd   :  { %p75_p7 = pnand %p74_p6, %p68_p3 }
   0xf   :  { %78 = shalt.err (!%p75_p7)
}
  0x10   :  { %18 = dma.hbm_to_vmem [thread:$0]  %s150_s0, 256, %s16_s10, [#allocation3]  }
  0x11   :  { %101 = dma.done.wait [#allocation3], 256  }
  0x12   :  { %102 = vsyncadd [#allocation3], 4294967040  ;;  %v106_v0 = vmov 0   ;;  %v26_v1 = vld [vmem:[%s151_s1] sm:$0xff]  ;;  %v28_v3 = vld [vmem:[#allocation2 + $0x8] sm:$0xff]  ;;  %s107_s23 = smov [#allocation5]  }
  0x13   :  { %56 = vset.pattern.permute.xlu0 %v106_v0  ;;  %v27_v2 = vld [vmem:[#allocation2] sm:$0xff]  ;;  %s44_s24 = sshll.u32 %s107_s23, 4  ;;  %s45_s24 = int_to_ptr.vmem [resolvable:$true] %s44_s24 }
  0x14   :  { %31 = vperm.xlu0 %56, %v26_v1   ;;  %s79_s0 = scalar_lea.vmem %s45_s24, 256  ;;  %p84_p9 = scmp.lt.s32.totalorder %s45_s24, %s45_s24 }
  0x15   :  { %p80_p8 = scmp.ne.s32.totalorder %s45_s24, %s79_s0  ;;  %p85_p10 = scmp.lt.s32.totalorder %s79_s0, %s79_s0 }
  0x17   :  { %p86_p11 = por %p85_p10, %p84_p9 }
  0x19   :  { %p87_p12 = pnand %p86_p11, %p80_p8 }
  0x93   :  { %v32_v4 = vpop.permute.xlu0 %31 }
  0x94   :  { %v34_v5 = vmax.f32 %v27_v2, %v32_v4  ;;  %v35_v6 = vmax.f32 %v28_v3, %v32_v4 }
  0x96   :  { %36 = vst [vmem:[#allocation5] sm:$0xff] %v34_v5  ;;  %37 = vst [vmem:[#allocation5 + $0x8] sm:$0xff] %v35_v6 }
  0x97   :  { %90 = shalt.err (!%p87_p12)
}
  0x98   :  { %s91_s26 = scalar_lea.hbm %s152_s2, 256 }
  0x99   :  { %p92_p13 = scmp.ne.s32.totalorder %s152_s2, %s91_s26  ;;  %p95_p0 = scmp.lt.u32.totalorder %s91_s26, %s152_s2 }
  0x9b   :  { %p97_p1 = pnand %p95_p0, %p92_p13 }
  0x9d   :  { %100 = shalt.err (!%p97_p1)
}
  0x9e   :  { %47 = dma.vmem_to_hbm [thread:$0]  %s45_s24, 256, %s152_s2, [#allocation4]  }
  0x9f   :  { %103 = dma.done.wait [#allocation4], 256  }
  0xa0   :  { %104 = vsyncadd [#allocation4], 4294967040 }
  0xa1   :  { %51 = vsyncpa [#allocation3], 1 }
  0xa2   :  { %52 = vsyncpa [#allocation4], 1 }

</bundles_post_ra>
